<compile_context>
chip_gen: v5e
topology: v5e:2x2
jax: 0.10.0
libtpu: 0.0.40
codegen_flags: <defaults>
</compile_context>

<pallas_src>
import numpy as np
import jax
import jax.numpy as jnp
from jax import lax
from jax.experimental import pallas as pl
from jax.experimental.pallas import tpu as pltpu


# ----------------------------------------------------------------------------
# Structured-weight construction (plain JAX, runs once per parameter set)
# ----------------------------------------------------------------------------
def _band_weight_mats(w, W):
    """w: (K, K, Cin, Cout) HWIO conv weight.

    Returns (K, W*Cin, W*Cout): one block-banded matrix per kernel row kh.
    The kw loop and the zero 'same' padding along W are folded into the band
    structure, so a KxK conv becomes K row-shifted matmuls on flattened rows.
    """
    K, _, Ci, Co = w.shape
    pad = K // 2
    shift = np.stack([np.eye(W, k=pad - kw, dtype=np.float32) for kw in range(K)])
    T = jnp.einsum("kvx,hkco->hvcxo", jnp.asarray(shift), w)
    return T.reshape(K, W * Ci, W * Co)


def _tile_bias(b, W):
    return jnp.tile(b, W).reshape(1, -1).astype(jnp.float32)


def _alpha_row(alpha, n):
    return jnp.full((1, n), alpha, jnp.float32)


def _ceil_to(x, m):
    return ((x + m - 1) // m) * m


def _pad_cols(a, width):
    return a if a.shape[1] == width else jnp.pad(a, ((0, 0), (0, width - a.shape[1])))


def _choose_nb(N, H, nb=None):
    """Images per grid step: target ~256 matmul rows while keeping an even
    number of grid steps when possible (v7x megacore)."""
    if nb is None:
        cap = max(1, 256 // H)
        nb = min(N // 2, cap) if (N % 2 == 0 and N >= 2) else min(N, cap)
        nb = max(nb, 1)
        while N % nb:
            nb -= 1
    assert N % nb == 0
    assert (nb * H) % 8 == 0 or nb == N, "nb*H must be a multiple of 8"
    return nb


# ----------------------------------------------------------------------------
# Fused inception forward: build once, call many times
# ----------------------------------------------------------------------------
def build_inception_forward(params, H, W, *, compute_dtype=jnp.bfloat16, nb=None):
    cdt = compute_dtype

    w1, b1, a1 = params["b1"]["w"], params["b1"]["b"], params["b1"]["alpha"]
    w21, b21, a21 = params["b2_1"]["w"], params["b2_1"]["b"], params["b2_1"]["alpha"]
    w22, b22, a22 = params["b2_2"]["w"], params["b2_2"]["b"], params["b2_2"]["alpha"]
    w31, b31, a31 = params["b3_1"]["w"], params["b3_1"]["b"], params["b3_1"]["alpha"]
    w32, b32, a32 = params["b3_2"]["w"], params["b3_2"]["b"], params["b3_2"]["alpha"]
    w4, b4, a4 = params["b4"]["w"], params["b4"]["b"], params["b4"]["alpha"]

    Cin = w1.shape[2]
    C1, C21, C23 = w1.shape[3], w21.shape[3], w22.shape[3]
    C31, C35, C4 = w31.shape[3], w32.shape[3], w4.shape[3]
    WCin = W * Cin
    WC1, WC21, WC23 = W * C1, W * C21, W * C23
    WC31, WC35, WC4 = W * C31, W * C35, W * C4
    WCTOT = WC1 + WC23 + WC35 + WC4

    # Fused 1x1 matmul: branch1x1 + both reduce convs in one MXU pass.  Column
    # blocks padded to 128-lane multiples so t2/t3 peel out at aligned offsets.
    P1, P2 = _ceil_to(WC1, 128), _ceil_to(WC21, 128)
    OFF2, OFF3 = P1, P1 + P2
    W1m = jnp.concatenate(
        [_pad_cols(_band_weight_mats(w1, W)[0], P1),
         _pad_cols(_band_weight_mats(w21, W)[0], P2),
         _band_weight_mats(w31, W)[0]], axis=1).astype(cdt)
    B1v = jnp.concatenate(
        [_pad_cols(_tile_bias(b1, W), P1),
         _pad_cols(_tile_bias(b21, W), P2),
         _tile_bias(b31, W)], axis=1)
    A1v = jnp.concatenate(
        [_pad_cols(_alpha_row(a1, WC1), P1),
         _pad_cols(_alpha_row(a21, WC21), P2),
         _alpha_row(a31, WC31)], axis=1)

    # 3x3 / 5x5 banded weights with kh folded into the contraction dimension.
    W3s = _band_weight_mats(w22, W).reshape(3 * WC21, WC23).astype(cdt)
    B3v, A3v = _tile_bias(b22, W), _alpha_row(a22, WC23)
    W5s = _band_weight_mats(w32, W).reshape(5 * WC31, WC35).astype(cdt)
    B5v, A5v = _tile_bias(b32, W), _alpha_row(a32, WC35)

    # Pool-branch 1x1.
    WPm = _band_weight_mats(w4, W)[0].astype(cdt)
    BPv, APv = _tile_bias(b4, W), _alpha_row(a4, WC4)

    # Max-pool pad value (differs from -inf only if x itself contains -inf).
    NEG = float(np.finfo(np.float32).min)

    def forward(x_nchw):
        N, Cx, Hx, Wx = x_nchw.shape
        assert (Cx, Hx, Wx) == (Cin, H, W), "input shape mismatch"
        nb_ = _choose_nb(N, H, nb)
        NBH = nb_ * H

        x2d = jnp.transpose(x_nchw, (0, 2, 3, 1)).reshape(N * H, WCin).astype(cdt)

        def kernel(x_ref, w1_ref, b1_ref, a1_ref, w3_ref, b3_ref, a3_ref,
                   w5_ref, b5_ref, a5_ref, wp_ref, bp_ref, ap_ref,
                   o_ref, t2pad_ref, t3pad_ref, hpool_ref, vpool_ref):
            xv = x_ref[...]                                     # (NBH, W*Cin) bf16

            # Row-within-image index, only needed to mask cross-image leakage
            # of the row-shifted reads when several images share one block.
            if nb_ > 1:
                r = lax.broadcasted_iota(jnp.int32, (NBH, 1), 0) % H

            def row_mask(kh, pad):
                return (r >= pad - kh) & (r < H + pad - kh)

            # ---- branch1x1 + both reduce 1x1 convs: one fused MXU matmul ----
            s = jnp.dot(xv, w1_ref[...], preferred_element_type=jnp.float32)
            s = s + b1_ref[...]
            s = jnp.where(s > 0, s, a1_ref[...] * s)            # PReLU (f32)
            o_ref[:, 0:WC1] = s[:, 0:WC1]                       # f1 segment
            t2 = s[:, OFF2:OFF2 + WC21]                         # stays in VMEM
            t3 = s[:, OFF3:OFF3 + WC31]                         # stays in VMEM

            def banded_conv(t, pad_ref, w_ref, b_ref, a_ref, K):
                pad = K // 2
                wci = t.shape[1]
                # halo rows only; interior rows are overwritten right below
                pad_ref[0:pad, :] = jnp.zeros((pad, wci), jnp.float32)
                pad_ref[pad + NBH:2 * pad + NBH, :] = jnp.zeros((pad, wci), jnp.float32)
                pad_ref[pad:pad + NBH, :] = t
                slabs = []
                for kh in range(K):
                    sl = pad_ref[kh:kh + NBH, :]
                    if nb_ > 1 and kh != pad:
                        sl = jnp.where(row_mask(kh, pad), sl, jnp.zeros_like(sl))
                    slabs.append(sl)
                cat = jnp.concatenate(slabs, axis=-1)           # (NBH, K*wci)
                y = jnp.dot(cat.astype(cdt), w_ref[...],
                            preferred_element_type=jnp.float32)
                y = y + b_ref[...]
                return jnp.where(y > 0, y, a_ref[...] * y)

            # ---- branch3x3: single K = 3*W*C21 contraction ------------------
            o_ref[:, WC1:WC1 + WC23] = banded_conv(
                t2, t2pad_ref, w3_ref, b3_ref, a3_ref, 3)

            # ---- branch5x5: single K = 5*W*C31 contraction ------------------
            o_ref[:, WC1 + WC23:WC1 + WC23 + WC35] = banded_conv(
                t3, t3pad_ref, w5_ref, b5_ref, a5_ref, 5)

            # ---- branch_pool: separable 3x3/s1/p1 max-pool + fused 1x1 ------
            # Horizontal 3-tap: pad columns hold NEG; written every step so
            # each TensorCore's scratch is initialised under megacore sharding.
            hpool_ref[:, 0:Cin] = jnp.full((NBH, Cin), NEG, jnp.float32)
            hpool_ref[:, (W + 1) * Cin:(W + 2) * Cin] = jnp.full((NBH, Cin), NEG,
                                                                 jnp.float32)
            xf = xv.astype(jnp.float32)
            hpool_ref[:, Cin:Cin + WCin] = xf
            hmax = jnp.maximum(hpool_ref[:, 0:WCin], xf)
            hmax = jnp.maximum(hmax, hpool_ref[:, 2 * Cin:2 * Cin + WCin])
            # Vertical 3-tap: halo rows only.
            vpool_ref[0:1, :] = jnp.full((1, WCin), NEG, jnp.float32)
            vpool_ref[1 + NBH:2 + NBH, :] = jnp.full((1, WCin), NEG, jnp.float32)
            vpool_ref[1:1 + NBH, :] = hmax
            pooled = hmax                                       # centre tap
            for kh in (0, 2):
                sl = vpool_ref[kh:kh + NBH, :]
                if nb_ > 1:
                    sl = jnp.where(row_mask(kh, 1), sl, jnp.full_like(sl, NEG))
                pooled = jnp.maximum(pooled, sl)
            p = jnp.dot(pooled.astype(cdt), wp_ref[...],
                        preferred_element_type=jnp.float32)
            p = p + bp_ref[...]
            p = jnp.where(p > 0, p, ap_ref[...] * p)
            o_ref[:, WC1 + WC23 + WC35:WCTOT] = p

        def const_spec(arr):
            return pl.BlockSpec(arr.shape, lambda n: (0, 0))

        y2d = pl.pallas_call(
            kernel,
            out_shape=jax.ShapeDtypeStruct((N * H, WCTOT), jnp.float32),
            grid=(N // nb_,),
            in_specs=[
                pl.BlockSpec((NBH, WCin), lambda n: (n, 0)),     # x rows
                const_spec(W1m), const_spec(B1v), const_spec(A1v),
                const_spec(W3s), const_spec(B3v), const_spec(A3v),
                const_spec(W5s), const_spec(B5v), const_spec(A5v),
                const_spec(WPm), const_spec(BPv), const_spec(APv),
            ],
            out_specs=pl.BlockSpec((NBH, WCTOT), lambda n: (n, 0)),
            scratch_shapes=[
                pltpu.VMEM((NBH + 2, WC21), jnp.float32),        # row-padded t2
                pltpu.VMEM((NBH + 4, WC31), jnp.float32),        # row-padded t3
                pltpu.VMEM((NBH, (W + 2) * Cin), jnp.float32),   # col-padded x
                pltpu.VMEM((NBH + 2, WCin), jnp.float32),        # row-padded hmax
            ],
            compiler_params=pltpu.CompilerParams(
                dimension_semantics=("parallel",)),
        )(x2d, W1m, B1v, A1v, W3s, B3v, A3v, W5s, B5v, A5v, WPm, BPv, APv)

        # Single fused output (branch-major, each segment (w, c)) -> NCHW.
        y = y2d.reshape(N, H, WCTOT)
        parts, off = [], 0
        for Ck in (C1, C23, C35, C4):
            parts.append(y[..., off:off + W * Ck].reshape(N, H, W, Ck))
            off += W * Ck
        out = jnp.concatenate(parts, axis=-1)
        return jnp.transpose(out, (0, 3, 1, 2))

    return jax.jit(forward)


# ----------------------------------------------------------------------------
# Parameter construction (deterministic, PyTorch-default-like init, HWIO)
# ----------------------------------------------------------------------------
def _conv_layer_params(key, K, cin, cout):
    kw_, kb = jax.random.split(key)
    fan_in = cin * K * K
    bound = 1.0 / np.sqrt(fan_in)
    w = jax.random.uniform(kw_, (K, K, cin, cout), jnp.float32, -bound, bound)
    b = jax.random.uniform(kb, (cout,), jnp.float32, -bound, bound)
    return {"w": w, "b": b, "alpha": jnp.float32(0.25)}  # nn.PReLU() default


def init_inception_params(key, in_channel, out1_1, out2_1, out2_3,
                          out3_1, out3_5, out4_1):
    ks = jax.random.split(key, 6)
    return {
        "b1":   _conv_layer_params(ks[0], 1, in_channel, out1_1),
        "b2_1": _conv_layer_params(ks[1], 1, in_channel, out2_1),
        "b2_2": _conv_layer_params(ks[2], 3, out2_1,     out2_3),
        "b3_1": _conv_layer_params(ks[3], 1, in_channel, out3_1),
        "b3_2": _conv_layer_params(ks[4], 5, out3_1,     out3_5),
        "b4":   _conv_layer_params(ks[5], 1, in_channel, out4_1),
    }


# ----------------------------------------------------------------------------
# Pure-JAX reference (lax.conv / reduce_window) used to verify the kernel
# ----------------------------------------------------------------------------
def _ref_forward(x_nchw, params):
    x = jnp.transpose(x_nchw, (0, 2, 3, 1))

    def conv_prelu(t, layer, pad):
        y = lax.conv_general_dilated(
            t, layer["w"], window_strides=(1, 1),
            padding=[(pad, pad), (pad, pad)],
            dimension_numbers=("NHWC", "HWIO", "NHWC"),
            precision=lax.Precision.HIGHEST)
        y = y + layer["b"]
        return jnp.where(y > 0, y, layer["alpha"] * y)

    f1 = conv_prelu(x, params["b1"], 0)
    f2 = conv_prelu(conv_prelu(x, params["b2_1"], 0), params["b2_2"], 1)
    f3 = conv_prelu(conv_prelu(x, params["b3_1"], 0), params["b3_2"], 2)
    pooled = lax.reduce_window(x, -jnp.inf, lax.max, (1, 3, 3, 1), (1, 1, 1, 1),
                               [(0, 0), (1, 1), (1, 1), (0, 0)])
    f4 = conv_prelu(pooled, params["b4"], 0)
    out = jnp.concatenate([f1, f2, f3, f4], axis=-1)
    return jnp.transpose(out, (0, 3, 1, 2))


if __name__ == "__main__":
    key = jax.random.PRNGKey(0)
    kx, kp, kx2 = jax.random.split(key, 3)

    N, Cin, H, W = 2, 4, 16, 16
    out1_1, out2_1, out2_3, out3_1, out3_5, out4_1 = 8, 4, 8, 4, 8, 8

    params = init_inception_params(kp, Cin, out1_1, out2_1, out2_3,
                                   out3_1, out3_5, out4_1)
    fwd = build_inception_forward(params, H, W)      # structured weights built once

    x = jax.random.normal(kx, (N, Cin, H, W), jnp.float32)
    y = jax.block_until_ready(fwd(x))

    expected_channels = out1_1 + out2_3 + out3_5 + out4_1
    assert y.shape == (N, expected_channels, H, W), y.shape
    assert bool(jnp.all(jnp.isfinite(y)))

    # Numerical check vs a plain-XLA f32 reference (tolerance covers bf16
    # matmul inputs with f32 accumulation; real bugs show up as errors >= 0.1).
    y_ref = _ref_forward(x, params)
    err = float(jnp.max(jnp.abs(y - y_ref)))
    assert err < 5e-2, f"max abs error vs reference: {err}"

    # Second run exercises the multi-image-per-grid-step path (N=4 -> nb=2,
    # grid=(2,)) including the cross-image row masks in the shifted branches.
    x4 = jax.random.normal(kx2, (4, Cin, H, W), jnp.float32)
    y4 = jax.block_until_ready(fwd(x4))
    y4_ref = _ref_forward(x4, params)
    err4 = float(jnp.max(jnp.abs(y4 - y4_ref)))
    assert err4 < 5e-2, f"max abs error vs reference (N=4): {err4}"

    print("KERNEL_OK")
</pallas_src>

<mosaic_0001>
module attributes {stable_mosaic.version = 11 : i64} {
  func.func @kernel(%arg0: i32, %arg1: memref<16x64xbf16, #tpu.memory_space<vmem>>, %arg2: memref<64x320xbf16, #tpu.memory_space<vmem>>, %arg3: memref<1x320xf32, #tpu.memory_space<vmem>>, %arg4: memref<1x320xf32, #tpu.memory_space<vmem>>, %arg5: memref<192x128xbf16, #tpu.memory_space<vmem>>, %arg6: memref<1x128xf32, #tpu.memory_space<vmem>>, %arg7: memref<1x128xf32, #tpu.memory_space<vmem>>, %arg8: memref<320x128xbf16, #tpu.memory_space<vmem>>, %arg9: memref<1x128xf32, #tpu.memory_space<vmem>>, %arg10: memref<1x128xf32, #tpu.memory_space<vmem>>, %arg11: memref<64x128xbf16, #tpu.memory_space<vmem>>, %arg12: memref<1x128xf32, #tpu.memory_space<vmem>>, %arg13: memref<1x128xf32, #tpu.memory_space<vmem>>, %arg14: memref<16x512xf32, #tpu.memory_space<vmem>>, %arg15: memref<18x64xf32, #tpu.memory_space<vmem>>, %arg16: memref<20x64xf32, #tpu.memory_space<vmem>>, %arg17: memref<16x72xf32, #tpu.memory_space<vmem>>, %arg18: memref<18x64xf32, #tpu.memory_space<vmem>>) attributes {dimension_semantics = [#tpu.dimension_semantics<parallel>], iteration_bounds = array<i64: 2>, scalar_prefetch = 0 : i64, scratch_operands = 4 : i64, tpu.core_type = #tpu.core_type<tc>, window_params = [{transform_indices = @transform_0, window_bounds = array<i64: 16, 64>}, {pipeline_mode = #tpu.pipeline_mode<synchronous>, transform_indices = @transform_1, window_bounds = array<i64: 64, 320>}, {pipeline_mode = #tpu.pipeline_mode<synchronous>, transform_indices = @transform_2, window_bounds = array<i64: 1, 320>}, {pipeline_mode = #tpu.pipeline_mode<synchronous>, transform_indices = @transform_3, window_bounds = array<i64: 1, 320>}, {pipeline_mode = #tpu.pipeline_mode<synchronous>, transform_indices = @transform_4, window_bounds = array<i64: 192, 128>}, {pipeline_mode = #tpu.pipeline_mode<synchronous>, transform_indices = @transform_5, window_bounds = array<i64: 1, 128>}, {pipeline_mode = #tpu.pipeline_mode<synchronous>, transform_indices = @transform_6, window_bounds = array<i64: 1, 128>}, {pipeline_mode = #tpu.pipeline_mode<synchronous>, transform_indices = @transform_7, window_bounds = array<i64: 320, 128>}, {pipeline_mode = #tpu.pipeline_mode<synchronous>, transform_indices = @transform_8, window_bounds = array<i64: 1, 128>}, {pipeline_mode = #tpu.pipeline_mode<synchronous>, transform_indices = @transform_9, window_bounds = array<i64: 1, 128>}, {pipeline_mode = #tpu.pipeline_mode<synchronous>, transform_indices = @transform_10, window_bounds = array<i64: 64, 128>}, {pipeline_mode = #tpu.pipeline_mode<synchronous>, transform_indices = @transform_11, window_bounds = array<i64: 1, 128>}, {pipeline_mode = #tpu.pipeline_mode<synchronous>, transform_indices = @transform_12, window_bounds = array<i64: 1, 128>}, {transform_indices = @transform_13, window_bounds = array<i64: 16, 512>}]} {
    %c0 = arith.constant 0 : index
    %c0_0 = arith.constant 0 : index
    %0 = vector.load %arg1[%c0, %c0_0] : memref<16x64xbf16, #tpu.memory_space<vmem>>, vector<16x64xbf16>
    %c0_1 = arith.constant 0 : index
    %c0_2 = arith.constant 0 : index
    %1 = vector.load %arg2[%c0_1, %c0_2] : memref<64x320xbf16, #tpu.memory_space<vmem>>, vector<64x320xbf16>
    %cst = arith.constant dense<0.000000e+00> : vector<16x320xf32>
    %2 = tpu.matmul %0, %1, %cst {dimension_numbers = #tpu.dot_dimension_numbers<[1], [0], [0], [1], [0, 0, 1, 1], [], []>} : vector<16x64xbf16>, vector<64x320xbf16>, vector<16x320xf32> -> vector<16x320xf32>
    %c0_3 = arith.constant 0 : index
    %c0_4 = arith.constant 0 : index
    %3 = vector.load %arg3[%c0_3, %c0_4] : memref<1x320xf32, #tpu.memory_space<vmem>>, vector<1x320xf32>
    %4 = vector.broadcast %3 : vector<1x320xf32> to vector<16x320xf32>
    %5 = arith.addf %2, %4 : vector<16x320xf32>
    %cst_5 = arith.constant 0.000000e+00 : f32
    %6 = vector.broadcast %cst_5 : f32 to vector<16x320xf32>
    %7 = arith.cmpf ogt, %5, %6 : vector<16x320xf32>
    %c0_6 = arith.constant 0 : index
    %c0_7 = arith.constant 0 : index
    %8 = vector.load %arg4[%c0_6, %c0_7] : memref<1x320xf32, #tpu.memory_space<vmem>>, vector<1x320xf32>
    %9 = vector.broadcast %8 : vector<1x320xf32> to vector<16x320xf32>
    %10 = arith.mulf %9, %5 : vector<16x320xf32>
    %11 = arith.select %7, %5, %10 : vector<16x320xi1>, vector<16x320xf32>
    %12 = vector.extract_strided_slice %11 {offsets = [0, 0], sizes = [16, 128], strides = [1, 1]} : vector<16x320xf32> to vector<16x128xf32>
    %c0_8 = arith.constant 0 : index
    %c0_9 = arith.constant 0 : index
    %13 = vector.load %arg14[%c0_8, %c0_9] : memref<16x512xf32, #tpu.memory_space<vmem>>, vector<16x128xf32>
    tpu.vector_store %arg14[%c0_8, %c0_9], %12 {strides = array<i32>} : memref<16x512xf32, #tpu.memory_space<vmem>>, vector<16x128xf32>,
    %14 = vector.extract_strided_slice %11 {offsets = [0, 128], sizes = [16, 64], strides = [1, 1]} : vector<16x320xf32> to vector<16x64xf32>
    %15 = vector.extract_strided_slice %11 {offsets = [0, 256], sizes = [16, 64], strides = [1, 1]} : vector<16x320xf32> to vector<16x64xf32>
    %cst_10 = arith.constant 0.000000e+00 : f32
    %16 = vector.broadcast %cst_10 : f32 to vector<1x64xf32>
    %c0_11 = arith.constant 0 : index
    %c0_12 = arith.constant 0 : index
    %17 = vector.load %arg15[%c0_11, %c0_12] : memref<18x64xf32, #tpu.memory_space<vmem>>, vector<1x64xf32>
    tpu.vector_store %arg15[%c0_11, %c0_12], %16 {strides = array<i32>} : memref<18x64xf32, #tpu.memory_space<vmem>>, vector<1x64xf32>,
    %cst_13 = arith.constant 0.000000e+00 : f32
    %18 = vector.broadcast %cst_13 : f32 to vector<1x64xf32>
    %c17 = arith.constant 17 : index
    %c0_14 = arith.constant 0 : index
    %19 = vector.load %arg15[%c17, %c0_14] : memref<18x64xf32, #tpu.memory_space<vmem>>, vector<1x64xf32>
    tpu.vector_store %arg15[%c17, %c0_14], %18 {strides = array<i32>} : memref<18x64xf32, #tpu.memory_space<vmem>>, vector<1x64xf32>,
    %c1 = arith.constant 1 : index
    %c0_15 = arith.constant 0 : index
    %20 = vector.load %arg15[%c1, %c0_15] : memref<18x64xf32, #tpu.memory_space<vmem>>, vector<16x64xf32>
    tpu.vector_store %arg15[%c1, %c0_15], %14 {strides = array<i32>} : memref<18x64xf32, #tpu.memory_space<vmem>>, vector<16x64xf32>,
    %c0_16 = arith.constant 0 : index
    %c0_17 = arith.constant 0 : index
    %21 = vector.load %arg15[%c0_16, %c0_17] : memref<18x64xf32, #tpu.memory_space<vmem>>, vector<16x64xf32>
    %c1_18 = arith.constant 1 : index
    %c0_19 = arith.constant 0 : index
    %22 = vector.load %arg15[%c1_18, %c0_19] : memref<18x64xf32, #tpu.memory_space<vmem>>, vector<16x64xf32>
    %c2 = arith.constant 2 : index
    %c0_20 = arith.constant 0 : index
    %23 = vector.load %arg15[%c2, %c0_20] : memref<18x64xf32, #tpu.memory_space<vmem>>, vector<16x64xf32>
    %24 = tpu.concatenate %21, %22, %23 in 1 : vector<16x64xf32>, vector<16x64xf32>, vector<16x64xf32> -> vector<16x192xf32>
    %25 = arith.truncf %24 : vector<16x192xf32> to vector<16x192xbf16>
    %c0_21 = arith.constant 0 : index
    %c0_22 = arith.constant 0 : index
    %26 = vector.load %arg5[%c0_21, %c0_22] : memref<192x128xbf16, #tpu.memory_space<vmem>>, vector<192x128xbf16>
    %cst_23 = arith.constant dense<0.000000e+00> : vector<16x128xf32>
    %27 = tpu.matmul %25, %26, %cst_23 {dimension_numbers = #tpu.dot_dimension_numbers<[1], [0], [0], [1], [0, 0, 1, 1], [], []>} : vector<16x192xbf16>, vector<192x128xbf16>, vector<16x128xf32> -> vector<16x128xf32>
    %c0_24 = arith.constant 0 : index
    %c0_25 = arith.constant 0 : index
    %28 = vector.load %arg6[%c0_24, %c0_25] : memref<1x128xf32, #tpu.memory_space<vmem>>, vector<1x128xf32>
    %29 = vector.broadcast %28 : vector<1x128xf32> to vector<16x128xf32>
    %30 = arith.addf %27, %29 : vector<16x128xf32>
    %cst_26 = arith.constant 0.000000e+00 : f32
    %31 = vector.broadcast %cst_26 : f32 to vector<16x128xf32>
    %32 = arith.cmpf ogt, %30, %31 : vector<16x128xf32>
    %c0_27 = arith.constant 0 : index
    %c0_28 = arith.constant 0 : index
    %33 = vector.load %arg7[%c0_27, %c0_28] : memref<1x128xf32, #tpu.memory_space<vmem>>, vector<1x128xf32>
    %34 = vector.broadcast %33 : vector<1x128xf32> to vector<16x128xf32>
    %35 = arith.mulf %34, %30 : vector<16x128xf32>
    %36 = arith.select %32, %30, %35 : vector<16x128xi1>, vector<16x128xf32>
    %c0_29 = arith.constant 0 : index
    %c128 = arith.constant 128 : index
    %37 = vector.load %arg14[%c0_29, %c128] : memref<16x512xf32, #tpu.memory_space<vmem>>, vector<16x128xf32>
    tpu.vector_store %arg14[%c0_29, %c128], %36 {strides = array<i32>} : memref<16x512xf32, #tpu.memory_space<vmem>>, vector<16x128xf32>,
    %cst_30 = arith.constant 0.000000e+00 : f32
    %38 = vector.broadcast %cst_30 : f32 to vector<2x64xf32>
    %c0_31 = arith.constant 0 : index
    %c0_32 = arith.constant 0 : index
    %39 = vector.load %arg16[%c0_31, %c0_32] : memref<20x64xf32, #tpu.memory_space<vmem>>, vector<2x64xf32>
    tpu.vector_store %arg16[%c0_31, %c0_32], %38 {strides = array<i32>} : memref<20x64xf32, #tpu.memory_space<vmem>>, vector<2x64xf32>,
    %cst_33 = arith.constant 0.000000e+00 : f32
    %40 = vector.broadcast %cst_33 : f32 to vector<2x64xf32>
    %c18 = arith.constant 18 : index
    %c0_34 = arith.constant 0 : index
    %41 = vector.load %arg16[%c18, %c0_34] : memref<20x64xf32, #tpu.memory_space<vmem>>, vector<2x64xf32>
    tpu.vector_store %arg16[%c18, %c0_34], %40 {strides = array<i32>} : memref<20x64xf32, #tpu.memory_space<vmem>>, vector<2x64xf32>,
    %c2_35 = arith.constant 2 : index
    %c0_36 = arith.constant 0 : index
    %42 = vector.load %arg16[%c2_35, %c0_36] : memref<20x64xf32, #tpu.memory_space<vmem>>, vector<16x64xf32>
    tpu.vector_store %arg16[%c2_35, %c0_36], %15 {strides = array<i32>} : memref<20x64xf32, #tpu.memory_space<vmem>>, vector<16x64xf32>,
    %c0_37 = arith.constant 0 : index
    %c0_38 = arith.constant 0 : index
    %43 = vector.load %arg16[%c0_37, %c0_38] : memref<20x64xf32, #tpu.memory_space<vmem>>, vector<16x64xf32>
    %c1_39 = arith.constant 1 : index
    %c0_40 = arith.constant 0 : index
    %44 = vector.load %arg16[%c1_39, %c0_40] : memref<20x64xf32, #tpu.memory_space<vmem>>, vector<16x64xf32>
    %c2_41 = arith.constant 2 : index
    %c0_42 = arith.constant 0 : index
    %45 = vector.load %arg16[%c2_41, %c0_42] : memref<20x64xf32, #tpu.memory_space<vmem>>, vector<16x64xf32>
    %c3 = arith.constant 3 : index
    %c0_43 = arith.constant 0 : index
    %46 = vector.load %arg16[%c3, %c0_43] : memref<20x64xf32, #tpu.memory_space<vmem>>, vector<16x64xf32>
    %c4 = arith.constant 4 : index
    %c0_44 = arith.constant 0 : index
    %47 = vector.load %arg16[%c4, %c0_44] : memref<20x64xf32, #tpu.memory_space<vmem>>, vector<16x64xf32>
    %48 = tpu.concatenate %43, %44, %45, %46, %47 in 1 : vector<16x64xf32>, vector<16x64xf32>, vector<16x64xf32>, vector<16x64xf32>, vector<16x64xf32> -> vector<16x320xf32>
    %49 = arith.truncf %48 : vector<16x320xf32> to vector<16x320xbf16>
    %c0_45 = arith.constant 0 : index
    %c0_46 = arith.constant 0 : index
    %50 = vector.load %arg8[%c0_45, %c0_46] : memref<320x128xbf16, #tpu.memory_space<vmem>>, vector<320x128xbf16>
    %cst_47 = arith.constant dense<0.000000e+00> : vector<16x128xf32>
    %51 = tpu.matmul %49, %50, %cst_47 {dimension_numbers = #tpu.dot_dimension_numbers<[1], [0], [0], [1], [0, 0, 1, 1], [], []>} : vector<16x320xbf16>, vector<320x128xbf16>, vector<16x128xf32> -> vector<16x128xf32>
    %c0_48 = arith.constant 0 : index
    %c0_49 = arith.constant 0 : index
    %52 = vector.load %arg9[%c0_48, %c0_49] : memref<1x128xf32, #tpu.memory_space<vmem>>, vector<1x128xf32>
    %53 = vector.broadcast %52 : vector<1x128xf32> to vector<16x128xf32>
    %54 = arith.addf %51, %53 : vector<16x128xf32>
    %cst_50 = arith.constant 0.000000e+00 : f32
    %55 = vector.broadcast %cst_50 : f32 to vector<16x128xf32>
    %56 = arith.cmpf ogt, %54, %55 : vector<16x128xf32>
    %c0_51 = arith.constant 0 : index
    %c0_52 = arith.constant 0 : index
    %57 = vector.load %arg10[%c0_51, %c0_52] : memref<1x128xf32, #tpu.memory_space<vmem>>, vector<1x128xf32>
    %58 = vector.broadcast %57 : vector<1x128xf32> to vector<16x128xf32>
    %59 = arith.mulf %58, %54 : vector<16x128xf32>
    %60 = arith.select %56, %54, %59 : vector<16x128xi1>, vector<16x128xf32>
    %c0_53 = arith.constant 0 : index
    %c256 = arith.constant 256 : index
    %61 = vector.load %arg14[%c0_53, %c256] : memref<16x512xf32, #tpu.memory_space<vmem>>, vector<16x128xf32>
    tpu.vector_store %arg14[%c0_53, %c256], %60 {strides = array<i32>} : memref<16x512xf32, #tpu.memory_space<vmem>>, vector<16x128xf32>,
    %cst_54 = arith.constant -3.40282347E+38 : f32
    %62 = vector.broadcast %cst_54 : f32 to vector<16x4xf32>
    %c0_55 = arith.constant 0 : index
    %c0_56 = arith.constant 0 : index
    %63 = vector.load %arg17[%c0_55, %c0_56] : memref<16x72xf32, #tpu.memory_space<vmem>>, vector<16x4xf32>
    tpu.vector_store %arg17[%c0_55, %c0_56], %62 {strides = array<i32>} : memref<16x72xf32, #tpu.memory_space<vmem>>, vector<16x4xf32>,
    %cst_57 = arith.constant -3.40282347E+38 : f32
    %64 = vector.broadcast %cst_57 : f32 to vector<16x4xf32>
    %c0_58 = arith.constant 0 : index
    %c68 = arith.constant 68 : index
    %65 = vector.load %arg17[%c0_58, %c68] : memref<16x72xf32, #tpu.memory_space<vmem>>, vector<16x4xf32>
    tpu.vector_store %arg17[%c0_58, %c68], %64 {strides = array<i32>} : memref<16x72xf32, #tpu.memory_space<vmem>>, vector<16x4xf32>,
    %66 = arith.extf %0 : vector<16x64xbf16> to vector<16x64xf32>
    %c0_59 = arith.constant 0 : index
    %c4_60 = arith.constant 4 : index
    %67 = vector.load %arg17[%c0_59, %c4_60] : memref<16x72xf32, #tpu.memory_space<vmem>>, vector<16x64xf32>
    tpu.vector_store %arg17[%c0_59, %c4_60], %66 {strides = array<i32>} : memref<16x72xf32, #tpu.memory_space<vmem>>, vector<16x64xf32>,
    %c0_61 = arith.constant 0 : index
    %c0_62 = arith.constant 0 : index
    %68 = vector.load %arg17[%c0_61, %c0_62] : memref<16x72xf32, #tpu.memory_space<vmem>>, vector<16x64xf32>
    %69 = arith.maximumf %68, %66 : vector<16x64xf32>
    %c0_63 = arith.constant 0 : index
    %c8 = arith.constant 8 : index
    %70 = vector.load %arg17[%c0_63, %c8] : memref<16x72xf32, #tpu.memory_space<vmem>>, vector<16x64xf32>
    %71 = arith.maximumf %69, %70 : vector<16x64xf32>
    %cst_64 = arith.constant -3.40282347E+38 : f32
    %72 = vector.broadcast %cst_64 : f32 to vector<1x64xf32>
    %c0_65 = arith.constant 0 : index
    %c0_66 = arith.constant 0 : index
    %73 = vector.load %arg18[%c0_65, %c0_66] : memref<18x64xf32, #tpu.memory_space<vmem>>, vector<1x64xf32>
    tpu.vector_store %arg18[%c0_65, %c0_66], %72 {strides = array<i32>} : memref<18x64xf32, #tpu.memory_space<vmem>>, vector<1x64xf32>,
    %cst_67 = arith.constant -3.40282347E+38 : f32
    %74 = vector.broadcast %cst_67 : f32 to vector<1x64xf32>
    %c17_68 = arith.constant 17 : index
    %c0_69 = arith.constant 0 : index
    %75 = vector.load %arg18[%c17_68, %c0_69] : memref<18x64xf32, #tpu.memory_space<vmem>>, vector<1x64xf32>
    tpu.vector_store %arg18[%c17_68, %c0_69], %74 {strides = array<i32>} : memref<18x64xf32, #tpu.memory_space<vmem>>, vector<1x64xf32>,
    %c1_70 = arith.constant 1 : index
    %c0_71 = arith.constant 0 : index
    %76 = vector.load %arg18[%c1_70, %c0_71] : memref<18x64xf32, #tpu.memory_space<vmem>>, vector<16x64xf32>
    tpu.vector_store %arg18[%c1_70, %c0_71], %71 {strides = array<i32>} : memref<18x64xf32, #tpu.memory_space<vmem>>, vector<16x64xf32>,
    %c0_72 = arith.constant 0 : index
    %c0_73 = arith.constant 0 : index
    %77 = vector.load %arg18[%c0_72, %c0_73] : memref<18x64xf32, #tpu.memory_space<vmem>>, vector<16x64xf32>
    %78 = arith.maximumf %71, %77 : vector<16x64xf32>
    %c2_74 = arith.constant 2 : index
    %c0_75 = arith.constant 0 : index
    %79 = vector.load %arg18[%c2_74, %c0_75] : memref<18x64xf32, #tpu.memory_space<vmem>>, vector<16x64xf32>
    %80 = arith.maximumf %78, %79 : vector<16x64xf32>
    %81 = arith.truncf %80 : vector<16x64xf32> to vector<16x64xbf16>
    %c0_76 = arith.constant 0 : index
    %c0_77 = arith.constant 0 : index
    %82 = vector.load %arg11[%c0_76, %c0_77] : memref<64x128xbf16, #tpu.memory_space<vmem>>, vector<64x128xbf16>
    %cst_78 = arith.constant dense<0.000000e+00> : vector<16x128xf32>
    %83 = tpu.matmul %81, %82, %cst_78 {dimension_numbers = #tpu.dot_dimension_numbers<[1], [0], [0], [1], [0, 0, 1, 1], [], []>} : vector<16x64xbf16>, vector<64x128xbf16>, vector<16x128xf32> -> vector<16x128xf32>
    %c0_79 = arith.constant 0 : index
    %c0_80 = arith.constant 0 : index
    %84 = vector.load %arg12[%c0_79, %c0_80] : memref<1x128xf32, #tpu.memory_space<vmem>>, vector<1x128xf32>
    %85 = vector.broadcast %84 : vector<1x128xf32> to vector<16x128xf32>
    %86 = arith.addf %83, %85 : vector<16x128xf32>
    %cst_81 = arith.constant 0.000000e+00 : f32
    %87 = vector.broadcast %cst_81 : f32 to vector<16x128xf32>
    %88 = arith.cmpf ogt, %86, %87 : vector<16x128xf32>
    %c0_82 = arith.constant 0 : index
    %c0_83 = arith.constant 0 : index
    %89 = vector.load %arg13[%c0_82, %c0_83] : memref<1x128xf32, #tpu.memory_space<vmem>>, vector<1x128xf32>
    %90 = vector.broadcast %89 : vector<1x128xf32> to vector<16x128xf32>
    %91 = arith.mulf %90, %86 : vector<16x128xf32>
    %92 = arith.select %88, %86, %91 : vector<16x128xi1>, vector<16x128xf32>
    %c0_84 = arith.constant 0 : index
    %c384 = arith.constant 384 : index
    %93 = vector.load %arg14[%c0_84, %c384] : memref<16x512xf32, #tpu.memory_space<vmem>>, vector<16x128xf32>
    tpu.vector_store %arg14[%c0_84, %c384], %92 {strides = array<i32>} : memref<16x512xf32, #tpu.memory_space<vmem>>, vector<16x128xf32>,
    return
  }
  func.func @transform_0(%arg0: i32) -> (i32, i32) {
    %c0_i32 = arith.constant 0 : i32
    %c0_i32_0 = arith.constant 0 : i32
    return %arg0, %c0_i32 : i32, i32
  }
  func.func @transform_1(%arg0: i32) -> (i32, i32) {
    %c0_i32 = arith.constant 0 : i32
    %c0_i32_0 = arith.constant 0 : i32
    %c0_i32_1 = arith.constant 0 : i32
    return %c0_i32, %c0_i32_0 : i32, i32
  }
  func.func @transform_2(%arg0: i32) -> (i32, i32) {
    %c0_i32 = arith.constant 0 : i32
    %c0_i32_0 = arith.constant 0 : i32
    %c0_i32_1 = arith.constant 0 : i32
    return %c0_i32, %c0_i32_0 : i32, i32
  }
  func.func @transform_3(%arg0: i32) -> (i32, i32) {
    %c0_i32 = arith.constant 0 : i32
    %c0_i32_0 = arith.constant 0 : i32
    %c0_i32_1 = arith.constant 0 : i32
    return %c0_i32, %c0_i32_0 : i32, i32
  }
  func.func @transform_4(%arg0: i32) -> (i32, i32) {
    %c0_i32 = arith.constant 0 : i32
    %c0_i32_0 = arith.constant 0 : i32
    %c0_i32_1 = arith.constant 0 : i32
    return %c0_i32, %c0_i32_0 : i32, i32
  }
  func.func @transform_5(%arg0: i32) -> (i32, i32) {
    %c0_i32 = arith.constant 0 : i32
    %c0_i32_0 = arith.constant 0 : i32
    %c0_i32_1 = arith.constant 0 : i32
    return %c0_i32, %c0_i32_0 : i32, i32
  }
  func.func @transform_6(%arg0: i32) -> (i32, i32) {
    %c0_i32 = arith.constant 0 : i32
    %c0_i32_0 = arith.constant 0 : i32
    %c0_i32_1 = arith.constant 0 : i32
    return %c0_i32, %c0_i32_0 : i32, i32
  }
  func.func @transform_7(%arg0: i32) -> (i32, i32) {
    %c0_i32 = arith.constant 0 : i32
    %c0_i32_0 = arith.constant 0 : i32
    %c0_i32_1 = arith.constant 0 : i32
    return %c0_i32, %c0_i32_0 : i32, i32
  }
  func.func @transform_8(%arg0: i32) -> (i32, i32) {
    %c0_i32 = arith.constant 0 : i32
    %c0_i32_0 = arith.constant 0 : i32
    %c0_i32_1 = arith.constant 0 : i32
    return %c0_i32, %c0_i32_0 : i32, i32
  }
  func.func @transform_9(%arg0: i32) -> (i32, i32) {
    %c0_i32 = arith.constant 0 : i32
    %c0_i32_0 = arith.constant 0 : i32
    %c0_i32_1 = arith.constant 0 : i32
    return %c0_i32, %c0_i32_0 : i32, i32
  }
  func.func @transform_10(%arg0: i32) -> (i32, i32) {
    %c0_i32 = arith.constant 0 : i32
    %c0_i32_0 = arith.constant 0 : i32
    %c0_i32_1 = arith.constant 0 : i32
    return %c0_i32, %c0_i32_0 : i32, i32
  }
  func.func @transform_11(%arg0: i32) -> (i32, i32) {
    %c0_i32 = arith.constant 0 : i32
    %c0_i32_0 = arith.constant 0 : i32
    %c0_i32_1 = arith.constant 0 : i32
    return %c0_i32, %c0_i32_0 : i32, i32
  }
  func.func @transform_12(%arg0: i32) -> (i32, i32) {
    %c0_i32 = arith.constant 0 : i32
    %c0_i32_0 = arith.constant 0 : i32
    %c0_i32_1 = arith.constant 0 : i32
    return %c0_i32, %c0_i32_0 : i32, i32
  }
  func.func @transform_13(%arg0: i32) -> (i32, i32) {
    %c0_i32 = arith.constant 0 : i32
    %c0_i32_0 = arith.constant 0 : i32
    return %arg0, %c0_i32 : i32, i32
  }
}

</mosaic_0001>

<bundles_post_ra>
// kernel: forward.1
= control target key start
LH: loop header
LB: loop body
LE: loop exit
PB: predicated region body
PF: predicated region fallthrough
CT: control target
= control target key end

     0   :  { %s1596_s25 = smov 0   ;;  %s1889_s0 = inlined_call_operand.vmem [shape: bf16[32,64], index: 0, kind: input, shape index: {}]   ;;  %s1890_s1 = inlined_call_operand.vmem [shape: bf16[64,320], index: 1, kind: input, shape index: {}]   ;;  %s1891_s2 = inlined_call_operand.vmem [shape: f32[1,320], index: 2, kind: input, shape index: {}]   ;;  %s1892_s3 = inlined_call_operand.vmem [shape: f32[1,320], index: 3, kind: input, shape index: {}]   ;;  %s1893_s4 = inlined_call_operand.vmem [shape: bf16[192,128], index: 4, kind: input, shape index: {}]   ;;  %s1894_s5 = inlined_call_operand.vmem [shape: f32[1,128], index: 5, kind: input, shape index: {}]   ;;  %s1895_s6 = inlined_call_operand.vmem [shape: f32[1,128], index: 6, kind: input, shape index: {}, may-alias: {6,9,12}]   ;;  %s1896_s7 = inlined_call_operand.vmem [shape: bf16[320,128], index: 7, kind: input, shape index: {}]   ;;  %s1897_s8 = inlined_call_operand.vmem [shape: f32[1,128], index: 8, kind: input, shape index: {}]   ;;  %s1898_s9 = inlined_call_operand.vmem [shape: f32[1,128], index: 9, kind: input, shape index: {}, may-alias: {6,9,12}]   ;;  %s1899_s10 = inlined_call_operand.vmem [shape: bf16[64,128], index: 10, kind: input, shape index: {}]   ;;  %s1900_s11 = inlined_call_operand.vmem [shape: f32[1,128], index: 11, kind: input, shape index: {}]   ;;  %s1901_s12 = inlined_call_operand.vmem [shape: f32[1,128], index: 12, kind: input, shape index: {}, may-alias: {6,9,12}]   ;;  %s1902_s13 = inlined_call_operand.vmem [shape: f32[32,512], index: 13, kind: output, shape index: {}]  }
   0x1 LB: > { %s1210_s26 = sadd.s32 4294967295, %s1519_s25   ;;  %p1214_p0 = scmp.ge.s32.totalorder %s1519_s25, 1  ;;  %s1519_s25 = sphi %s1596_s25, %s23_s25  }
   0x2   : > { %p388_p1 = scmp.lt.s32.totalorder %s1519_s25, 3 }
   0x4   : > { %p389_p2 = pnand %p1214_p0, %p388_p1 }
   0x5   : > { %s1215_s15 = sshll.u32 (!%p389_p2), %s1210_s26, 1  ;;  %s1523_s17 = smov (!%p389_p2), 4  }
   0x6   : > { %392 = sbr.rel (%p389_p2) target bundleno = 461 (0x1cd), region = 72  ;;  %p434_p3 = scmp.lt.s32.totalorder (!%p389_p2), %s1215_s15, 3 }
   0x7   : > { %s1524_s20 = smov (!%p389_p2), 120   ;;  %s1525_s22 = smov (!%p389_p2), 64  }
   0xb   : > { %v1435_v0 = vld [vmem:[%s1890_s1 + $0x4c] sm:$0xf]  ;;  %v1264_v1 = vld [vmem:[%s1890_s1 + $0x54] sm:$0xf0]  ;;  %v1270_v2 = vld [vmem:[%s1890_s1 + $0x50] sm:$0xf] }
   0xc   : > { %v1267_v3 = vor.u32 %v1435_v0, %v1264_v1  ;;  %v1437_v4 = vld [vmem:[%s1890_s1 + $0x58] sm:$0xf0]  ;;  %v1432_v5 = vld [vmem:[%s1890_s1 + $0x34] sm:$0xf]  ;;  %v1252_v6 = vld [vmem:[%s1890_s1 + $0x3c] sm:$0xf0] }
   0xd   : > { %v1271_v7 = vor.u32 %v1437_v4, %v1270_v2  ;;  %v1258_v8 = vld [vmem:[%s1890_s1 + $0x38] sm:$0xf]  ;;  %v1434_v9 = vld [vmem:[%s1890_s1 + $0x40] sm:$0xf0]  ;;  %v1255_v10 = vor.u32 %v1432_v5, %v1252_v6  ;;  %v1429_v12 = vld [vmem:[%s1890_s1 + $0x1c] sm:$0xf] }
   0xe   : > { %564 = vmatpush.bf16.msra.mxu1 %v1267_v3  ;;  %v1259_v11 = vor.u32 %v1434_v9, %v1258_v8  ;;  %v1240_v13 = vld [vmem:[%s1890_s1 + $0x24] sm:$0xf0]  ;;  %v1246_v14 = vld [vmem:[%s1890_s1 + $0x20] sm:$0xf]  ;;  %v1431_v15 = vld [vmem:[%s1890_s1 + $0x28] sm:$0xf0] }
   0xf   : > { %578 = vmatpush.bf16.msra.mxu2 %v1271_v7  ;;  %v1426_v16 = vld [vmem:[%s1890_s1 + $0x4] sm:$0xf]  ;;  %v1228_v17 = vld [vmem:[%s1890_s1 + $0xc] sm:$0xf0]  ;;  %vm616_vm0 = vcmask 516096   ;;  %vm1041_vm1 = vcmask 31744   ;;  %v1243_v18 = vor.u32 %v1429_v12, %v1240_v13  ;;  %v1247_v21 = vor.u32 %v1431_v15, %v1246_v14 }
  0x10   : > { %s1904_s15 = smov (!%p434_p3, %s1215_s15), 3  ;;  %v1234_v19 = vld [vmem:[%s1890_s1 + $0x8] sm:$0xf]  ;;  %v1521_v20 = vmov 0.0   ;;  %vm1044_vm2 = vcmask 589344   ;;  %v1231_v25 = vor.u32 %v1426_v16, %v1228_v17  ;;  %vm542_vm3 = vcmask 523264  }
  0x11   : > { %617 = vst.msk [vmem:[#allocation2] sm:$0x1] %vm616_vm0, %v1521_v20  ;;  %s1216_s27 = sshll.u32 %s1904_s15, 2  ;;  %v1428_v22 = vld [vmem:[%s1890_s1 + $0x10] sm:$0xf0]  ;;  %v1449_v43 = vld [vmem:[%s1893_s4 + $0x58] sm:$0xff] }
  0x12   : > { %565 = vmatpush.bf16.msra.mxu1 %v1255_v10  ;;  %618 = vst.msk [vmem:[#allocation2 + $0x11] sm:$0x1] %vm616_vm0, %v1521_v20  ;;  %v1522_v23 = vmov -3.4028235e+38   ;;  %s437_s16 = scalar_lea.vmem %s1889_s0, %s1216_s27  ;;  %v1235_v28 = vor.u32 %v1428_v22, %v1234_v19  ;;  %v1262_v31 = vld [vmem:[%s1890_s1 + $0x48] sm:$0xf] }
  0x13   : > { %579 = vmatpush.bf16.msra.mxu2 %v1259_v11  ;;  %1042 = vst.msk [vmem:[#allocation4] sm:$0xff] %vm1041_vm1, %v1522_v23  ;;  %v1664_v24 = vld [vmem:[%s437_s16] sm:$0xff]   ;;  %v1436_v32 = vld [vmem:[%s1890_s1 + $0x50] sm:$0xf0]  ;;  %v1250_v34 = vld [vmem:[%s1890_s1 + $0x30] sm:$0xf] }
  0x14   : > { %1043 = vst.msk [vmem:[#allocation4 + $0x8] sm:$0xff] %vm1041_vm1, %v1522_v23  ;;  %v1047_v26 = vunpack.c.l.bf16 %v1664_v24  ;;  %v1048_v27 = vunpack.c.h.bf16 %v1664_v24  ;;  %v1425_v30 = vld [vmem:[%s437_s16] sm:$0xff]  ;;  %v1263_v33 = vor.u32 %v1436_v32, %v1262_v31  ;;  %v1433_v35 = vld [vmem:[%s1890_s1 + $0x38] sm:$0xf0]  ;;  %v1238_v37 = vld [vmem:[%s1890_s1 + $0x18] sm:$0xf] }
  0x15   : > { %1045 = vst.msk [vmem:[#allocation4] sm:$0xff] %vm1044_vm2, %v1522_v23  ;;  %v1251_v36 = vor.u32 %v1433_v35, %v1250_v34  ;;  %v1430_v38 = vld [vmem:[%s1890_s1 + $0x20] sm:$0xf0]  ;;  %v1226_v40 = vld [vmem:[%s1890_s1] sm:$0xf]  ;;  %v1448_v44 = vld [vmem:[%s1893_s4 + $0x50] sm:$0xff] }
  0x16   : > { %566 = vmatpush.bf16.msra.mxu1 %v1243_v18  ;;  %1046 = vst.msk [vmem:[#allocation4 + $0x8] sm:$0xff] %vm1044_vm2, %v1522_v23  ;;  %v1487_v29 = vpack.i.bf16 %v1048_v27, %v1047_v26  ;;  %550 = vmatpush.bf16.msra.mxu0 %v1263_v33  ;;  %v1239_v39 = vor.u32 %v1430_v38, %v1238_v37  ;;  %v1427_v41 = vld [vmem:[%s1890_s1 + $0x8] sm:$0xf0]  ;;  %vm1057_vm4 = vcmask 556064   ;;  %v1446_v49 = vld [vmem:[%s1893_s4 + $0x40] sm:$0xff]  ;;  %v1469_v50 = vld [vmem:[%s1896_s7 + $0x98] sm:$0xff] }
  0x17   : > { %580 = vmatpush.bf16.msra.mxu2 %v1247_v21  ;;  %1074 = vst.msk [vmem:[#allocation5] sm:$0x1] %vm616_vm0, %v1522_v23  ;;  %v1227_v42 = vor.u32 %v1427_v41, %v1226_v40  ;;  %v1447_v48 = vld [vmem:[%s1893_s4 + $0x48] sm:$0xff]  ;;  %vm782_vm5 = vcmask 517120   ;;  %v1720_v51 = vld [vmem:[%s1891_s2] sm:$0x7] }
  0x18   : > { %1075 = vst.msk [vmem:[#allocation5 + $0x11] sm:$0x1] %vm616_vm0, %v1522_v23  ;;  %1488 = vrot.lane.b32.xlu0 %v1487_v29, %s1523_s17  ;;  %v1468_v52 = vld [vmem:[%s1896_s7 + $0x90] sm:$0xff]  ;;  %v1729_v53 = vld [vmem:[%s1892_s3] sm:$0x7]  ;;  %v468_v54 = vperm.slane %v1720_v51, 1 }
  0x19   : > { %783 = vst.msk [vmem:[#allocation3] sm:$0x3] %vm782_vm5, %v1521_v20  ;;  %v597_v56 = vperm.slane %v1729_v53, 1  ;;  %v1467_v57 = vld [vmem:[%s1896_s7 + $0x88] sm:$0xff]  ;;  %v1466_v61 = vld [vmem:[%s1896_s7 + $0x80] sm:$0xff]  ;;  %v469_v63 = vperm.slane %v1720_v51, 2 }
  0x1a   : > { %567 = vmatpush.bf16.msra.mxu1 %v1231_v25  ;;  %551 = vmatpush.bf16.msra.mxu0 %v1251_v36  ;;  %784 = vst.msk [vmem:[#allocation3 + $0x12] sm:$0x3] %vm782_vm5, %v1521_v20  ;;  %v598_v1 = vperm.slane %v1729_v53, 2  ;;  %v1465_v5 = vld [vmem:[%s1896_s7 + $0x78] sm:$0xff]  ;;  %v1464_v9 = vld [vmem:[%s1896_s7 + $0x70] sm:$0xff]  ;;  %v1463_v14 = vld [vmem:[%s1896_s7 + $0x68] sm:$0xff] }
  0x1b   : > { %581 = vmatpush.bf16.msra.mxu2 %v1235_v28  ;;  %v1457_v6 = vld [vmem:[%s1896_s7 + $0x38] sm:$0xff]  ;;  %v1456_v10 = vld [vmem:[%s1896_s7 + $0x30] sm:$0xff]  ;;  %v1462_v18 = vld [vmem:[%s1896_s7 + $0x60] sm:$0xff]  ;;  %s1424_s24 = sshll.u32 %s1904_s15, 5 }
  0x1c   : > { %v1455_v38 = vld [vmem:[%s1896_s7 + $0x28] sm:$0xff]  ;;  %v1445_v40 = vld [vmem:[%s1893_s4 + $0x38] sm:$0xff]  ;;  %v1454_v41 = vld [vmem:[%s1896_s7 + $0x20] sm:$0xff]  ;;  %s1828_s14 = scalar_lea.vmem %s1902_s13, %s1424_s24 }
  0x1d   : > { %1273 = vmatmul.msk.bf16.vlgmr.msra.gmra.mxu1 %vm542_vm3, %v1425_v30  ;;  %742 = vmatpush.bf16.msra.mxu3 %v1445_v40 }
  0x1e   : > { %1274 = vmatmul.msk.bf16.vlgmr.msra.gmra.mxu2 %vm542_vm3, %v1425_v30  ;;  %552 = vmatpush.bf16.msra.mxu0 %v1239_v39  ;;  %v1461_v39 = vld [vmem:[%s1896_s7 + $0x58] sm:$0xff] }
  0x1f   : > { %1001 = vmatpush.bf16.msrb.mxu2 %v1465_v5  ;;  %987 = vmatpush.bf16.msrb.mxu1 %v1457_v6  ;;  %v1472_v6 = vld [vmem:[%s1899_s10 + $0x10] sm:$0xff] }
  0x22   : > { %553 = vmatpush.bf16.msra.mxu0 %v1227_v42  ;;  %v1460_v42 = vld [vmem:[%s1896_s7 + $0x50] sm:$0xff] }
  0x23   : > { %1002 = vmatpush.bf16.msrb.mxu2 %v1464_v9  ;;  %988 = vmatpush.bf16.msrb.mxu1 %v1456_v10 }
  0x25   : > { %1272 = vmatmul.msk.bf16.vlgmr.msra.gmra.mxu0 %vm542_vm3, %v1425_v30 }
  0x26   : > { %760 = vmatpush.bf16.msrb.mxu0 %v1449_v43  ;;  %v1444_v43 = vld [vmem:[%s1893_s4 + $0x30] sm:$0xff] }
  0x27   : > { %1003 = vmatpush.bf16.msrb.mxu2 %v1463_v14  ;;  %989 = vmatpush.bf16.msrb.mxu1 %v1455_v38 }
  0x28   : > { %743 = vmatpush.bf16.msra.mxu3 %v1444_v43 }
  0x2a   : > { %761 = vmatpush.bf16.msrb.mxu0 %v1448_v44  ;;  %v1453_v44 = vld [vmem:[%s1896_s7 + $0x18] sm:$0xff] }
  0x2b   : > { %1004 = vmatpush.bf16.msrb.mxu2 %v1462_v18  ;;  %990 = vmatpush.bf16.msrb.mxu1 %v1454_v41 }
  0x2e   : > { %762 = vmatpush.bf16.msrb.mxu0 %v1447_v48  ;;  %v1458_v48 = vld [vmem:[%s1896_s7 + $0x40] sm:$0xff] }
  0x2f   : > { %1005 = vmatpush.bf16.msrb.mxu2 %v1461_v39  ;;  %991 = vmatpush.bf16.msrb.mxu1 %v1453_v44 }
  0x32   : > { %763 = vmatpush.bf16.msrb.mxu0 %v1446_v49  ;;  %v1442_v49 = vld [vmem:[%s1893_s4 + $0x20] sm:$0xff] }
  0x33   : > { %1006 = vmatpush.bf16.msrb.mxu2 %v1460_v42 }
  0x36   : > { %1019 = vmatpush.bf16.msra.mxu0 %v1469_v50  ;;  %v1451_v50 = vld [vmem:[%s1896_s7 + $0x8] sm:$0xff] }
  0x3a   : > { %1020 = vmatpush.bf16.msra.mxu0 %v1468_v52  ;;  %v1441_v52 = vld [vmem:[%s1893_s4 + $0x18] sm:$0xff] }
  0x3e   : > { %1021 = vmatpush.bf16.msra.mxu0 %v1467_v57  ;;  %v1440_v57 = vld [vmem:[%s1893_s4 + $0x10] sm:$0xff] }
  0x42   : > { %1022 = vmatpush.bf16.msra.mxu0 %v1466_v61 }
  0x8a   : > { %v1489_v45 = vpop.permute.xlu0 %1488 }
  0x8b   : > { %v1491_v46 = vunpack.i.h.bf16 %v1489_v45  ;;  %v1490_v47 = vunpack.i.l.bf16 %v1489_v45  ;;  %v1459_v45 = vld [vmem:[%s1896_s7 + $0x48] sm:$0xff] }
  0x8c   : > { %1007 = vmatpush.bf16.msrb.mxu2 %v1459_v45 }
  0x8d   : > { %1059 = vst.msk [vmem:[#allocation4 + $0x8] sm:$0xff] %vm1057_vm4, %v1491_v46  ;;  %v1443_v46 = vld [vmem:[%s1893_s4 + $0x28] sm:$0xff] }
  0x8e   : > { %1058 = vst.msk [vmem:[#allocation4] sm:$0xff] %vm1057_vm4, %v1490_v47  ;;  %744 = vmatpush.bf16.msra.mxu3 %v1443_v46  ;;  %v1452_v47 = vld [vmem:[%s1896_s7 + $0x10] sm:$0xff] }
  0x8f   : > { %992 = vmatpush.bf16.msrb.mxu1 %v1452_v47  ;;  %v1507_v47 = vld [vmem:[%s1897_s8] ss:$0 sm:$0xff] }
  0x90   : > { %1008 = vmatpush.bf16.msrb.mxu2 %v1458_v48 }
  0x92   : > { %745 = vmatpush.bf16.msra.mxu3 %v1442_v49 }
  0x93   : > { %993 = vmatpush.bf16.msrb.mxu1 %v1451_v50 }
  0x94   : > { %v1742_v62 = vld [vmem:[#allocation4 + $0x8] sm:$0xff] }
  0x95   : > { %v1732_v55 = vld [vmem:[#allocation4] sm:$0xff] }
  0x96   : > { %1066 = vrot.lane.b32.xlu1 %v1732_v55, %s1524_s20  ;;  %746 = vmatpush.bf16.msra.mxu3 %v1441_v52 }
  0x9a   : > { %v569_v58 = vpop.f32.mrf.mxu1  ;;  %747 = vmatpush.bf16.msra.mxu3 %v1440_v57 }
  0x9b   : > { %v570_v59 = vadd.f32 %v569_v58, %v468_v54  ;;  %v596_v58 = vperm.slane %v1729_v53, 0  ;;  %v1438_v53 = vld [vmem:[%s1893_s4] sm:$0xff] }
  0x9d   : > { %vm589_vm6 = vcmp.gt.f32.partialorder %v570_v59, 0.0  ;;  %v603_v60 = vmul.f32 %v597_v56, %v570_v59 }
  0x9e   : > { %1068 = vrot.lane.b32.xlu1 %v1742_v62, %s1524_s20 }
  0x9f   : > { %v609_v0 = vsel %vm589_vm6, %v570_v59, %v603_v60  ;;  %v1439_v60 = vld [vmem:[%s1893_s4 + $0x8] sm:$0xff] }
  0xa0   : > { %619 = vst.msk [vmem:[#allocation2 + $0x1] sm:$0xff] %vm542_vm3, %v609_v0  ;;  %748 = vmatpush.bf16.msra.mxu3 %v1439_v60  ;;  %v1062_v0 = vmax.f32 %v1732_v55, %v1047_v26 }
  0xa1   : > { %v583_v2 = vpop.f32.mrf.mxu2 }
  0xa2   : > { %v584_v3 = vadd.f32 %v583_v2, %v469_v63  ;;  %v571_v4 = vpop.f32.mrf.mxu1  ;;  %v555_v59 = vpop.f32.mrf.mxu0 }
  0xa3   : > { %v572_v7 = vadd.f32 %v571_v4, %v468_v54  ;;  %v1450_v54 = vld [vmem:[%s1896_s7] sm:$0xff] }
  0xa4   : > { %vm590_vm7 = vcmp.gt.f32.partialorder %v584_v3, 0.0  ;;  %v604_v8 = vmul.f32 %v598_v1, %v584_v3  ;;  %994 = vmatpush.bf16.msrb.mxu1 %v1450_v54  ;;  %749 = vmatpush.bf16.msra.mxu3 %v1438_v53 }
  0xa5   : > { %vm592_vm8 = vcmp.gt.f32.partialorder %v572_v7, 0.0  ;;  %v606_v11 = vmul.f32 %v597_v56, %v572_v7  ;;  %v467_v56 = vperm.slane %v1720_v51, 0 }
  0xa6   : > { %v610_v12 = vsel %vm590_vm7, %v584_v3, %v604_v8  ;;  %v1063_v8 = vmax.f32 %v1742_v62, %v1048_v27 }
  0xa7   : > { %785 = vst.msk [vmem:[#allocation3 + $0x2] sm:$0xff] %vm542_vm3, %v610_v12  ;;  %v612_v13 = vsel %vm592_vm8, %v572_v7, %v606_v11  ;;  %v623_v20 = vld [vmem:[#allocation2 + $0x1] sm:$0xff]  ;;  %v556_v61 = vadd.f32 %v555_v59, %v467_v56 }
  0xa8   : > { %620 = vst.msk [vmem:[#allocation2 + $0x9] sm:$0xff] %vm542_vm3, %v612_v13  ;;  %v1471_v7 = vld [vmem:[%s1899_s10 + $0x8] sm:$0xff]  ;;  %v621_v40 = vld [vmem:[#allocation2] sm:$0xff] }
  0xa9   : > { %v585_v15 = vpop.f32.mrf.mxu2  ;;  %vm588_vm10 = vcmp.gt.f32.partialorder %v556_v61, 0.0  ;;  %v602_v51 = vmul.f32 %v596_v58, %v556_v61 }
  0xaa   : > { %v586_v16 = vadd.f32 %v585_v15, %v469_v63  ;;  %v557_v4 = vpop.f32.mrf.mxu0 }
  0xab   : > { %v608_v63 = vsel %vm588_vm10, %v556_v61, %v602_v51  ;;  %v558_v5 = vadd.f32 %v557_v4, %v467_v56  ;;  %v1508_v56 = vld [vmem:[%s1898_s9] ss:$0 sm:$0xff] }
  0xac   : > { %vm593_vm9 = vcmp.gt.f32.partialorder %v586_v16, 0.0  ;;  %v607_v17 = vmul.f32 %v598_v1, %v586_v16  ;;  %614 = vst [vmem:[%s1828_s14] sm:$0xff] %v608_v63  ;;  %v1473_v1 = vld [vmem:[%s1899_s10 + $0x18] sm:$0xff] }
  0xad   : > { %1130 = vmatpush.bf16.msrb.mxu3 %v1473_v1  ;;  %vm591_vm11 = vcmp.gt.f32.partialorder %v558_v5, 0.0  ;;  %v605_v26 = vmul.f32 %v596_v58, %v558_v5 }
  0xae   : > { %v613_v19 = vsel %vm593_vm9, %v586_v16, %v607_v17  ;;  %v789_v32 = vld [vmem:[#allocation3 + $0x1] sm:$0xff] }
  0xaf   : > { %786 = vst.msk [vmem:[#allocation3 + $0xa] sm:$0xff] %vm542_vm3, %v613_v19  ;;  %v625_v21 = vld [vmem:[#allocation2 + $0x2] sm:$0xff]  ;;  %v626_v22 = vld [vmem:[#allocation2 + $0xa] sm:$0xff]  ;;  %v611_v55 = vsel %vm591_vm11, %v558_v5, %v605_v26  ;;  %v791_v14 = vld [vmem:[#allocation3 + $0x2] sm:$0xff] }
  0xb0   : > { %v624_v23 = vld [vmem:[#allocation2 + $0x9] sm:$0xff]  ;;  %v638_v25 = vpack.c.bf16 %v626_v22, %v625_v21  ;;  %615 = vst [vmem:[%s1828_s14 + $0x20] sm:$0xff] %v611_v55  ;;  %v1470_v16 = vld [vmem:[%s1899_s10] sm:$0xff]  ;;  %v787_v21 = vld [vmem:[#allocation3] sm:$0xff] }
  0xb1   : > { %v1492_v28 = vpack.i.bf16 %v624_v23, %v623_v20  ;;  %1131 = vmatpush.bf16.msrb.mxu3 %v1472_v6  ;;  %v622_v41 = vld [vmem:[#allocation2 + $0x8] sm:$0xff]  ;;  %v1510_v5 = vld [vmem:[%s1895_s6] ss:$0 sm:$0xff] }
  0xb2   : > { %1323 = vmatmul.msk.bf16.vlgmr.msrb.gmra.mxu0 %vm542_vm3, %v638_v25 }
  0xb3   : > { %1493 = vrot.lane.b32.xlu0 %v1492_v28, %s1525_s22 }
  0xb5   : > { %1132 = vmatpush.bf16.msrb.mxu3 %v1471_v7 }
  0xb6   : > { %v793_v29 = vld [vmem:[#allocation3 + $0x3] sm:$0xff]  ;;  %v794_v30 = vld [vmem:[#allocation3 + $0xb] sm:$0xff] }
  0xb7   : > { %v1497_v31 = vpack.i.bf16 %v794_v30, %v793_v29  ;;  %v790_v33 = vld [vmem:[#allocation3 + $0x9] sm:$0xff] }
  0xb8   : > { %v795_v34 = vld [vmem:[#allocation3 + $0x4] sm:$0xff]  ;;  %v796_v35 = vld [vmem:[#allocation3 + $0xc] sm:$0xff]  ;;  %v1502_v36 = vpack.i.bf16 %v790_v33, %v789_v32 }
  0xb9   : > { %1498 = vrot.lane.b32.xlu2 %v1497_v31, %s1525_s22  ;;  %v819_v37 = vpack.c.bf16 %v796_v35, %v795_v34  ;;  %v792_v15 = vld [vmem:[#allocation3 + $0xa] sm:$0xff]  ;;  %1133 = vmatpush.bf16.msrb.mxu3 %v1470_v16 }
  0xba   : > { %v788_v25 = vld [vmem:[#allocation3 + $0x8] sm:$0xff] }
  0xc1   : > { %1503 = vrot.lane.b32.xlu2 %v1502_v36, %s1525_s22 }
  0xc2   : > { %1404 = vmatmul.msk.bf16.vlgmr.msra.gmra.mxu0 %vm542_vm3, %v819_v37 }
 0x108   : > { %v1067_v2 = vpop.permute.xlu1 %1066 }
 0x109   : > { %v1072_v3 = vmax.f32 %v1062_v0, %v1067_v2  ;;  %v1509_v0 = vld [vmem:[%s1894_s5] ss:$0 sm:$0xff] }
 0x10b   : > { %1076 = vst.msk [vmem:[#allocation5 + $0x1] sm:$0xff] %vm542_vm3, %v1072_v3 }
 0x110   : > { %v1069_v9 = vpop.permute.xlu1 %1068 }
 0x111   : > { %v1073_v11 = vmax.f32 %v1063_v8, %v1069_v9 }
 0x112   : > { %v1078_v62 = vld [vmem:[#allocation5] sm:$0xff] }
 0x113   : > { %v1499_v10 = vpop.permute.xlu2 %1498  ;;  %1077 = vst.msk [vmem:[#allocation5 + $0x9] sm:$0xff] %vm542_vm3, %v1073_v11  ;;  %v1080_v28 = vmax.f32 %v1072_v3, %v1078_v62 }
 0x114   : > { %v1501_v12 = vunpack.i.h.bf16 %v1499_v10  ;;  %v1500_v13 = vunpack.i.l.bf16 %v1499_v10 }
 0x116   : > { %v815_v17 = vsel %vm542_vm3, %v791_v14, %v1500_v13  ;;  %v816_v24 = vsel %vm542_vm3, %v792_v15, %v1501_v12  ;;  %v1511_v12 = vld [vmem:[%s1900_s11] ss:$0 sm:$0xff] }
 0x117   : > { %v818_v27 = vpack.c.bf16 %v816_v24, %v815_v17  ;;  %v1512_v14 = vld [vmem:[%s1901_s12] ss:$0 sm:$0xff] }
 0x119   : > { %1009 = vmatmul.bf16.vlgmr.msrb.gmra.mxu2 %v818_v27 }
 0x11a   : > { %v1079_v22 = vld [vmem:[#allocation5 + $0x8] sm:$0xff] }
 0x11b   : > { %v1504_v18 = vpop.permute.xlu2 %1503  ;;  %v1082_v23 = vld [vmem:[#allocation5 + $0x2] sm:$0xff]  ;;  %v1081_v29 = vmax.f32 %v1073_v11, %v1079_v22  ;;  %v1083_v32 = vld [vmem:[#allocation5 + $0xa] sm:$0xff] }
 0x11c   : > { %v1506_v19 = vunpack.i.h.bf16 %v1504_v18  ;;  %v1505_v20 = vunpack.i.l.bf16 %v1504_v18  ;;  %v1084_v34 = vmax.f32 %v1080_v28, %v1082_v23 }
 0x11d   : > { %v1085_v35 = vmax.f32 %v1081_v29, %v1083_v32 }
 0x11e   : > { %v813_v30 = vsel %vm542_vm3, %v787_v21, %v1505_v20  ;;  %v814_v31 = vsel %vm542_vm3, %v788_v25, %v1506_v19 }
 0x11f   : > { %v817_v33 = vpack.c.bf16 %v814_v31, %v813_v30  ;;  %v1086_v36 = vpack.c.bf16 %v1085_v35, %v1084_v34 }
 0x121   : > { %995 = vmatmul.bf16.vlgmr.msrb.gmra.mxu1 %v817_v33 }
 0x125   : > { %v1494_v37 = vpop.permute.xlu0 %1493 }
 0x126   : > { %v1496_v38 = vunpack.i.h.bf16 %v1494_v37  ;;  %v1495_v39 = vunpack.i.l.bf16 %v1494_v37 }
 0x128   : > { %v635_v42 = vsel %vm542_vm3, %v621_v40, %v1495_v39  ;;  %v636_v43 = vsel %vm542_vm3, %v622_v41, %v1496_v38 }
 0x129   : > { %v637_v44 = vpack.c.bf16 %v636_v43, %v635_v42 }
 0x12b   : > { %750 = vmatmul.bf16.vlgmr.msra.gmra.mxu3 %v637_v44 }
 0x12f   : > { %v765_v45 = vpop.f32.mrf.mxu0 }
 0x137   : > { %v767_v46 = vpop.f32.mrf.mxu0 }
 0x13b   : > { %1421 = vmatmul.msk.bf16.vlgmr.msrb.gmra.mxu3 %vm542_vm3, %v1086_v36 }
 0x13f   : > { %v1024_v52 = vpop.f32.mrf.mxu0 }
 0x147   : > { %v1026_v63 = vpop.f32.mrf.mxu0 }
 0x19c   : > { %v1010_v48 = vpop.f32.mrf.mxu2 }
 0x19e   : > { %v996_v49 = vpop.f32.mrf.mxu1 }
 0x19f   : > { %v997_v50 = vadd.f32 %v1507_v47, %v996_v49 }
 0x1a1   : > { %v1011_v54 = vadd.f32 %v1010_v48, %v997_v50 }
 0x1a3   : > { %v1025_v57 = vadd.f32 %v1024_v52, %v1011_v54 }
 0x1a4   : > { %v1012_v51 = vpop.f32.mrf.mxu2 }
 0x1a5   : > { %vm1029_vm12 = vcmp.gt.f32.partialorder %v1025_v57, 0.0  ;;  %v1035_v58 = vmul.f32 %v1508_v56, %v1025_v57 }
 0x1a6   : > { %v998_v59 = vpop.f32.mrf.mxu1 }
 0x1a7   : > { %v1037_v60 = vsel %vm1029_vm12, %v1025_v57, %v1035_v58  ;;  %v999_v61 = vadd.f32 %v1507_v47, %v998_v59 }
 0x1a8   : > { %1039 = vst [vmem:[%s1828_s14 + $0x10] sm:$0xff] %v1037_v60 }
 0x1a9   : > { %v1013_v53 = vadd.f32 %v1012_v51, %v999_v61 }
 0x1ab   : > { %v1027_v1 = vadd.f32 %v1026_v63, %v1013_v53 }
 0x1ad   : > { %vm1030_vm13 = vcmp.gt.f32.partialorder %v1027_v1, 0.0  ;;  %v1036_v2 = vmul.f32 %v1508_v56, %v1027_v1 }
 0x1ae   : > { %v751_v3 = vpop.f32.mrf.mxu3 }
 0x1af   : > { %v752_v4 = vadd.f32 %v1509_v0, %v751_v3  ;;  %v1038_v6 = vsel %vm1030_vm13, %v1027_v1, %v1036_v2 }
 0x1b0   : > { %1040 = vst [vmem:[%s1828_s14 + $0x30] sm:$0xff] %v1038_v6 }
 0x1b1   : > { %v766_v26 = vadd.f32 %v765_v45, %v752_v4 }
 0x1b3   : > { %vm770_vm14 = vcmp.gt.f32.partialorder %v766_v26, 0.0  ;;  %v776_v55 = vmul.f32 %v1510_v5, %v766_v26 }
 0x1b5   : > { %v778_v7 = vsel %vm770_vm14, %v766_v26, %v776_v55 }
 0x1b6   : > { %780 = vst [vmem:[%s1828_s14 + $0x8] sm:$0xff] %v778_v7  ;;  %v753_v8 = vpop.f32.mrf.mxu3 }
 0x1b7   : > { %v754_v9 = vadd.f32 %v1509_v0, %v753_v8 }
 0x1b9   : > { %v768_v10 = vadd.f32 %v767_v46, %v754_v9 }
 0x1bb   : > { %vm771_vm15 = vcmp.gt.f32.partialorder %v768_v10, 0.0  ;;  %v777_v11 = vmul.f32 %v1510_v5, %v768_v10 }
 0x1bd   : > { %v779_v13 = vsel %vm771_vm15, %v768_v10, %v777_v11 }
 0x1be   : > { %781 = vst [vmem:[%s1828_s14 + $0x28] sm:$0xff] %v779_v13  ;;  %v1135_v15 = vpop.f32.mrf.mxu3 }
 0x1bf   : > { %v1136_v16 = vadd.f32 %v1511_v12, %v1135_v15 }
 0x1c1   : > { %vm1140_vm0 = vcmp.gt.f32.partialorder %v1136_v16, 0.0  ;;  %v1146_v17 = vmul.f32 %v1512_v14, %v1136_v16 }
 0x1c3   : > { %v1148_v24 = vsel %vm1140_vm0, %v1136_v16, %v1146_v17 }
 0x1c4   : > { %1150 = vst [vmem:[%s1828_s14 + $0x18] sm:$0xff] %v1148_v24 }
 0x1c6   : > { %v1137_v27 = vpop.f32.mrf.mxu3 }
 0x1c7   : > { %v1138_v62 = vadd.f32 %v1511_v12, %v1137_v27 }
 0x1c9   : > { %vm1141_vm1 = vcmp.gt.f32.partialorder %v1138_v62, 0.0  ;;  %v1147_v18 = vmul.f32 %v1512_v14, %v1138_v62 }
 0x1cb   : > { %v1149_v19 = vsel %vm1141_vm1, %v1138_v62, %v1147_v18 }
 0x1cc   : > { %1151 = vst [vmem:[%s1828_s14 + $0x38] sm:$0xff] %v1149_v19 }
 0x1cd PF: > { %s23_s25 = sadd.s32 1, %s1519_s25  }
 0x1ce   : > { %p20_p4 = scmp.ge.s32.totalorder %s23_s25, 4  }
 0x1d0   :  { %22 = sbr.rel (!%p20_p4) target bundleno = 1 (0x1), region = 102 }

</bundles_post_ra>
